<compile_context>
chip_gen: v7x
topology: tpu7x:2x2x1
jax: 0.10.0
libtpu: 0.0.40
codegen_flags: <defaults>
</compile_context>

<pallas_src>
from functools import partial

import jax
import jax.numpy as jnp
from jax.experimental import pallas as pl
from jax.experimental.pallas import tpu as pltpu

DROP_PROB = 0.1
BLOCK_SIZE = 3  # odd -> pad = block_size // 2 keeps the spatial shape (as in the module)


def _round_up(x, m):
    return ((x + m - 1) // m) * m


def _vmem_capacity_bytes():
    """Physical VMEM of the local chip; conservative fallback if unqueryable."""
    try:
        info = pltpu.get_tpu_info()
        cap = getattr(info, "vmem_capacity_bytes", None)
        if cap:
            return int(cap)
    except Exception:
        pass
    return 64 << 20  # conservative (v7x-sized); safe everywhere


def _plan(B, C, HW, itemsize, rand_bytes, mask_bytes):
    """Pick the channel-chunk tile and the scoped-VMEM limit, chip-aware.

    tc must divide C and satisfy the (8,128) block rule on the sublane dim
    (tc % 8 == 0 or tc == C).  We grow the x-tile toward ~VMEM/16 per buffer
    (~8 MiB on v5e/v6e's 128 MiB, ~4 MiB on v7x's 64 MiB); when the whole
    problem fits, the grid collapses to a single step.
    """
    cap = _vmem_capacity_bytes()
    budget = max(1 << 20, cap // 16)
    divisors = [d for d in range(1, C + 1) if C % d == 0]
    cands = [d for d in divisors if d % 8 == 0 or d == C]
    fits = [d for d in cands if B * d * HW * itemsize <= budget]
    tc = max(fits) if fits else min(cands)
    tile_bytes = B * tc * HW * itemsize
    # in + out, double-buffered, plus resident rand + mask scratch + slack.
    need = 4 * tile_bytes + rand_bytes + mask_bytes + (2 << 20)
    vmem_limit = int(min(cap - (4 << 20), max(cap // 2, need)))
    return tc, vmem_limit


def _fused_kernel(rand_ref, x_ref, out_ref, mask_ref, *, gamma, block_size, H, W):
    """Fused DropBlock: step 0 builds the scaled mask in VMEM; every step applies it.

    rand_ref : (B, Hq, Wq) f32, halo-padded with +inf (seed mask 0 in the halo),
               Hq multiple of 8, Wq multiple of 128.  Fetched once (constant index map).
    x_ref    : (B, tc, H*W)   current channel chunk (lane-dense).
    out_ref  : (B, tc, H*W)
    mask_ref : (B, 1, H*W) f32 VMEM scratch = block_mask * (numel / sum(block_mask)).
    """
    pad = block_size // 2

    @pl.when(pl.program_id(0) == 0)
    def _():
        B, Hq, Wq = rand_ref.shape
        # Bernoulli seed mask: (rand < gamma).float(); halo -> 0.
        m = (rand_ref[...] < gamma).astype(jnp.float32)            # (B, Hq, Wq)

        # Separable stride-1 max pool of size block_size, done with circular
        # rolls on the halo-padded field.  For interior positions this equals
        # the zero-padded max pool regardless of the roll direction convention:
        # wrapped entries both land in and come from the halo (s <= pad).
        pooled = m
        for axis, size in ((2, Wq), (1, Hq)):
            acc = pooled
            for s in range(1, pad + 1):
                acc = jnp.maximum(acc, pltpu.roll(pooled, shift=s, axis=axis))
                acc = jnp.maximum(acc, pltpu.roll(pooled, shift=size - s, axis=axis))
            pooled = acc
        block_mask = 1.0 - pooled                                   # interior exactly 0/1

        # Global normalization numel / sum(block_mask) over the interior only.
        hh = jax.lax.broadcasted_iota(jnp.int32, block_mask.shape, 1)
        ww = jax.lax.broadcasted_iota(jnp.int32, block_mask.shape, 2)
        inside = (hh >= pad) & (hh < pad + H) & (ww >= pad) & (ww < pad + W)
        total = jnp.sum(jnp.where(inside, block_mask, 0.0))
        # max(total, 1) only guards the degenerate all-dropped case (total is
        # integer-valued, so otherwise identical to the PyTorch reference).
        scale = float(B * H * W) / jnp.maximum(total, 1.0)

        # Relayout (B, H, W) -> (B, 1, H*W) lane-dense, once per call: one
        # (B, 1, W) slice + store per row (no jnp.reshape inside the kernel).
        for h in range(H):
            row = block_mask[:, pad + h:pad + h + 1, pad:pad + W] * scale
            mask_ref[:, 0:1, h * W:(h + 1) * W] = row

    # Lane-dense broadcast-multiply (mask pre-scaled, so this is the whole apply).
    out_ref[...] = (x_ref[...] * mask_ref[...]).astype(out_ref.dtype)


def dropblock2d(x, rand_u, drop_prob=DROP_PROB, block_size=BLOCK_SIZE):
    """Training-mode DropBlock2D forward. rand_u ~ U[0,1), shape (B, H, W)."""
    if drop_prob == 0.0:
        return x  # matches `if not self.training or self.drop_prob == 0.0`
    B, C, H, W = x.shape
    HW = H * W
    pad = block_size // 2
    # gamma = drop_prob / bs^2 * W^2 / (W - bs + 1)^2   (uses x.shape[-1], like PyTorch)
    gamma = drop_prob / block_size ** 2 * W ** 2 / (W - block_size + 1) ** 2

    # Halo-pad the random field with +inf (seed mask 0 there) and round the
    # padded dims up to sublane/lane multiples so in-kernel rolls stay on
    # native layouts.  Extra padding only ever adds more zero halo.
    Hq = _round_up(H + 2 * pad, 8)
    Wq = _round_up(W + 2 * pad, 128)
    rand_p = jnp.pad(
        rand_u.astype(jnp.float32),
        ((0, 0), (pad, Hq - H - pad), (pad, Wq - W - pad)),
        constant_values=float("inf"),
    )

    x_flat = x.reshape(B, C, HW)  # contiguous HBM reshape: free
    rand_bytes = B * Hq * Wq * 4
    mask_bytes = B * HW * 4
    tc, vmem_limit = _plan(B, C, HW, x.dtype.itemsize, rand_bytes, mask_bytes)
    grid = (C // tc,)

    # NOTE: could add input_output_aliases={1: 0} if the caller no longer needs x.
    # TODO(synk): for very large B*H*W the step-0 mask phase should itself be
    # tiled over batch (partial sums + late scale) to bound VMEM on v7x.
    out = pl.pallas_call(
        partial(_fused_kernel, gamma=gamma, block_size=block_size, H=H, W=W),
        out_shape=jax.ShapeDtypeStruct((B, C, HW), x.dtype),
        grid=grid,
        in_specs=[
            pl.BlockSpec((B, Hq, Wq), lambda c: (0, 0, 0)),   # resident, fetched once
            pl.BlockSpec((B, tc, HW), lambda c: (0, c, 0)),
        ],
        out_specs=pl.BlockSpec((B, tc, HW), lambda c: (0, c, 0)),
        scratch_shapes=[pltpu.VMEM((B, 1, HW), jnp.float32)],
        compiler_params=pltpu.CompilerParams(
            dimension_semantics=("arbitrary",),  # step-0 mask init needs every step on one core
            vmem_limit_bytes=vmem_limit,
        ),
    )(rand_p, x_flat)
    return out.reshape(B, C, H, W)


def dropblock2d_ref(x, rand_u, drop_prob, block_size):
    """Pure-JAX reference mirroring the PyTorch module."""
    B, C, H, W = x.shape
    gamma = drop_prob / block_size ** 2 * W ** 2 / (W - block_size + 1) ** 2
    mask = (rand_u < gamma).astype(jnp.float32)
    p = block_size // 2
    pooled = jax.lax.reduce_window(
        mask, -jnp.inf, jax.lax.max,
        (1, block_size, block_size), (1, 1, 1),
        [(0, 0), (p, p), (p, p)],
    )
    block_mask = 1.0 - pooled
    out = x * block_mask[:, None, :, :]
    return out * block_mask.size / block_mask.sum()


if __name__ == "__main__":
    key = jax.random.PRNGKey(0)
    kx, kr = jax.random.split(key)
    B, C, H, W = 2, 4, 16, 16
    x = jax.random.normal(kx, (B, C, H, W), dtype=jnp.float32)
    # Random field generated outside the kernel for determinism / parity with
    # the reference (stands in for torch.rand).
    rand_u = jax.random.uniform(kr, (B, H, W), dtype=jnp.float32)

    out = jax.block_until_ready(dropblock2d(x, rand_u))
    ref = dropblock2d_ref(x, rand_u, DROP_PROB, BLOCK_SIZE)
    assert out.shape == x.shape and out.dtype == x.dtype
    assert jnp.allclose(out, ref, atol=1e-5, rtol=1e-5), "Pallas kernel mismatch vs reference"
    print("KERNEL_OK")
</pallas_src>

<mosaic_0001>
module attributes {stable_mosaic.version = 11 : i64} {
  func.func @_fused_kernel(%arg0: i32, %arg1: memref<2x24x128xf32, #tpu.memory_space<vmem>>, %arg2: memref<2x4x256xf32, #tpu.memory_space<vmem>>, %arg3: memref<2x4x256xf32, #tpu.memory_space<vmem>>, %arg4: memref<2x1x256xf32, #tpu.memory_space<vmem>>) attributes {dimension_semantics = [#tpu.dimension_semantics<arbitrary>], iteration_bounds = array<i64: 1>, scalar_prefetch = 0 : i64, scratch_operands = 1 : i64, tpu.core_type = #tpu.core_type<tc>, window_params = [{pipeline_mode = #tpu.pipeline_mode<synchronous>, transform_indices = @transform_0, window_bounds = array<i64: 2, 24, 128>}, {transform_indices = @transform_1, window_bounds = array<i64: 2, 4, 256>}, {transform_indices = @transform_2, window_bounds = array<i64: 2, 4, 256>}]} {
    %c0_i32 = arith.constant 0 : i32
    %0 = arith.cmpi eq, %arg0, %c0_i32 : i32
    %1 = arith.extui %0 : i1 to i32
    %c0_i32_0 = arith.constant 0 : i32
    %2 = arith.cmpi ne, %1, %c0_i32_0 : i32
    scf.if %2 {
      %c0_9 = arith.constant 0 : index
      %c0_10 = arith.constant 0 : index
      %c0_11 = arith.constant 0 : index
      %8 = vector.load %arg1[%c0_9, %c0_10, %c0_11] : memref<2x24x128xf32, #tpu.memory_space<vmem>>, vector<2x24x128xf32>
      %cst = arith.constant 0.0145124719 : f32
      %9 = vector.broadcast %cst : f32 to vector<2x24x128xf32>
      %10 = arith.cmpf olt, %8, %9 : vector<2x24x128xf32>
      %11 = arith.extui %10 : vector<2x24x128xi1> to vector<2x24x128xi32>
      %12 = arith.sitofp %11 : vector<2x24x128xi32> to vector<2x24x128xf32>
      %c1_i32 = arith.constant 1 : i32
      %13 = tpu.dynamic_rotate %12 by %c1_i32 dim 2 : vector<2x24x128xf32>, i32 -> vector<2x24x128xf32>
      %14 = arith.maximumf %12, %13 : vector<2x24x128xf32>
      %c127_i32 = arith.constant 127 : i32
      %15 = tpu.dynamic_rotate %12 by %c127_i32 dim 2 : vector<2x24x128xf32>, i32 -> vector<2x24x128xf32>
      %16 = arith.maximumf %14, %15 : vector<2x24x128xf32>
      %c1_i32_12 = arith.constant 1 : i32
      %17 = tpu.dynamic_rotate %16 by %c1_i32_12 dim 1 : vector<2x24x128xf32>, i32 -> vector<2x24x128xf32>
      %18 = arith.maximumf %16, %17 : vector<2x24x128xf32>
      %c23_i32 = arith.constant 23 : i32
      %19 = tpu.dynamic_rotate %16 by %c23_i32 dim 1 : vector<2x24x128xf32>, i32 -> vector<2x24x128xf32>
      %20 = arith.maximumf %18, %19 : vector<2x24x128xf32>
      %cst_13 = arith.constant 1.000000e+00 : f32
      %21 = vector.broadcast %cst_13 : f32 to vector<2x24x128xf32>
      %22 = arith.subf %21, %20 : vector<2x24x128xf32>
      %23 = tpu.iota {dimensions = array<i32: 1>} : vector<2x24x128xi32>
      %24 = tpu.iota {dimensions = array<i32: 2>} : vector<2x24x128xi32>
      %c1_i32_14 = arith.constant 1 : i32
      %25 = vector.broadcast %c1_i32_14 : i32 to vector<2x24x128xi32>
      %26 = arith.cmpi sge, %23, %25 : vector<2x24x128xi32>
      %c17_i32 = arith.constant 17 : i32
      %27 = vector.broadcast %c17_i32 : i32 to vector<2x24x128xi32>
      %28 = arith.cmpi slt, %23, %27 : vector<2x24x128xi32>
      %29 = arith.andi %26, %28 : vector<2x24x128xi1>
      %c1_i32_15 = arith.constant 1 : i32
      %30 = vector.broadcast %c1_i32_15 : i32 to vector<2x24x128xi32>
      %31 = arith.cmpi sge, %24, %30 : vector<2x24x128xi32>
      %32 = arith.andi %29, %31 : vector<2x24x128xi1>
      %c17_i32_16 = arith.constant 17 : i32
      %33 = vector.broadcast %c17_i32_16 : i32 to vector<2x24x128xi32>
      %34 = arith.cmpi slt, %24, %33 : vector<2x24x128xi32>
      %35 = arith.andi %32, %34 : vector<2x24x128xi1>
      %cst_17 = arith.constant 0.000000e+00 : f32
      %36 = vector.broadcast %cst_17 : f32 to vector<2x24x128xf32>
      %37 = arith.select %35, %22, %36 : vector<2x24x128xi1>, vector<2x24x128xf32>
      %38 = vector.shape_cast %37 : vector<2x24x128xf32> to vector<1x2x24x128xf32>
      %cst_18 = arith.constant dense<0.000000e+00> : vector<1xf32>
      %39 = vector.multi_reduction <add>, %38, %cst_18 [1, 2, 3] : vector<1x2x24x128xf32> to vector<1xf32>
      %40 = vector.shape_cast %39 : vector<1xf32> to vector<1x1x1x1xf32>
      %41 = vector.extract %40[0, 0, 0, 0] : f32 from vector<1x1x1x1xf32>
      %cst_19 = arith.constant 1.000000e+00 : f32
      %42 = arith.maximumf %41, %cst_19 : f32
      %cst_20 = arith.constant 5.120000e+02 : f32
      %43 = arith.divf %cst_20, %42 : f32
      %44 = vector.extract_strided_slice %22 {offsets = [0, 1, 1], sizes = [2, 1, 16], strides = [1, 1, 1]} : vector<2x24x128xf32> to vector<2x1x16xf32>
      %45 = vector.broadcast %43 : f32 to vector<2x1x16xf32>
      %46 = arith.mulf %44, %45 : vector<2x1x16xf32>
      %c0_21 = arith.constant 0 : index
      %c0_22 = arith.constant 0 : index
      %c0_23 = arith.constant 0 : index
      %47 = vector.load %arg4[%c0_21, %c0_22, %c0_23] : memref<2x1x256xf32, #tpu.memory_space<vmem>>, vector<2x1x16xf32>
      tpu.vector_store %arg4[%c0_21, %c0_22, %c0_23], %46 {strides = array<i32>} : memref<2x1x256xf32, #tpu.memory_space<vmem>>, vector<2x1x16xf32>,
      %48 = vector.extract_strided_slice %22 {offsets = [0, 2, 1], sizes = [2, 1, 16], strides = [1, 1, 1]} : vector<2x24x128xf32> to vector<2x1x16xf32>
      %49 = vector.broadcast %43 : f32 to vector<2x1x16xf32>
      %50 = arith.mulf %48, %49 : vector<2x1x16xf32>
      %c0_24 = arith.constant 0 : index
      %c0_25 = arith.constant 0 : index
      %c16 = arith.constant 16 : index
      %51 = vector.load %arg4[%c0_24, %c0_25, %c16] : memref<2x1x256xf32, #tpu.memory_space<vmem>>, vector<2x1x16xf32>
      tpu.vector_store %arg4[%c0_24, %c0_25, %c16], %50 {strides = array<i32>} : memref<2x1x256xf32, #tpu.memory_space<vmem>>, vector<2x1x16xf32>,
      %52 = vector.extract_strided_slice %22 {offsets = [0, 3, 1], sizes = [2, 1, 16], strides = [1, 1, 1]} : vector<2x24x128xf32> to vector<2x1x16xf32>
      %53 = vector.broadcast %43 : f32 to vector<2x1x16xf32>
      %54 = arith.mulf %52, %53 : vector<2x1x16xf32>
      %c0_26 = arith.constant 0 : index
      %c0_27 = arith.constant 0 : index
      %c32 = arith.constant 32 : index
      %55 = vector.load %arg4[%c0_26, %c0_27, %c32] : memref<2x1x256xf32, #tpu.memory_space<vmem>>, vector<2x1x16xf32>
      tpu.vector_store %arg4[%c0_26, %c0_27, %c32], %54 {strides = array<i32>} : memref<2x1x256xf32, #tpu.memory_space<vmem>>, vector<2x1x16xf32>,
      %56 = vector.extract_strided_slice %22 {offsets = [0, 4, 1], sizes = [2, 1, 16], strides = [1, 1, 1]} : vector<2x24x128xf32> to vector<2x1x16xf32>
      %57 = vector.broadcast %43 : f32 to vector<2x1x16xf32>
      %58 = arith.mulf %56, %57 : vector<2x1x16xf32>
      %c0_28 = arith.constant 0 : index
      %c0_29 = arith.constant 0 : index
      %c48 = arith.constant 48 : index
      %59 = vector.load %arg4[%c0_28, %c0_29, %c48] : memref<2x1x256xf32, #tpu.memory_space<vmem>>, vector<2x1x16xf32>
      tpu.vector_store %arg4[%c0_28, %c0_29, %c48], %58 {strides = array<i32>} : memref<2x1x256xf32, #tpu.memory_space<vmem>>, vector<2x1x16xf32>,
      %60 = vector.extract_strided_slice %22 {offsets = [0, 5, 1], sizes = [2, 1, 16], strides = [1, 1, 1]} : vector<2x24x128xf32> to vector<2x1x16xf32>
      %61 = vector.broadcast %43 : f32 to vector<2x1x16xf32>
      %62 = arith.mulf %60, %61 : vector<2x1x16xf32>
      %c0_30 = arith.constant 0 : index
      %c0_31 = arith.constant 0 : index
      %c64 = arith.constant 64 : index
      %63 = vector.load %arg4[%c0_30, %c0_31, %c64] : memref<2x1x256xf32, #tpu.memory_space<vmem>>, vector<2x1x16xf32>
      tpu.vector_store %arg4[%c0_30, %c0_31, %c64], %62 {strides = array<i32>} : memref<2x1x256xf32, #tpu.memory_space<vmem>>, vector<2x1x16xf32>,
      %64 = vector.extract_strided_slice %22 {offsets = [0, 6, 1], sizes = [2, 1, 16], strides = [1, 1, 1]} : vector<2x24x128xf32> to vector<2x1x16xf32>
      %65 = vector.broadcast %43 : f32 to vector<2x1x16xf32>
      %66 = arith.mulf %64, %65 : vector<2x1x16xf32>
      %c0_32 = arith.constant 0 : index
      %c0_33 = arith.constant 0 : index
      %c80 = arith.constant 80 : index
      %67 = vector.load %arg4[%c0_32, %c0_33, %c80] : memref<2x1x256xf32, #tpu.memory_space<vmem>>, vector<2x1x16xf32>
      tpu.vector_store %arg4[%c0_32, %c0_33, %c80], %66 {strides = array<i32>} : memref<2x1x256xf32, #tpu.memory_space<vmem>>, vector<2x1x16xf32>,
      %68 = vector.extract_strided_slice %22 {offsets = [0, 7, 1], sizes = [2, 1, 16], strides = [1, 1, 1]} : vector<2x24x128xf32> to vector<2x1x16xf32>
      %69 = vector.broadcast %43 : f32 to vector<2x1x16xf32>
      %70 = arith.mulf %68, %69 : vector<2x1x16xf32>
      %c0_34 = arith.constant 0 : index
      %c0_35 = arith.constant 0 : index
      %c96 = arith.constant 96 : index
      %71 = vector.load %arg4[%c0_34, %c0_35, %c96] : memref<2x1x256xf32, #tpu.memory_space<vmem>>, vector<2x1x16xf32>
      tpu.vector_store %arg4[%c0_34, %c0_35, %c96], %70 {strides = array<i32>} : memref<2x1x256xf32, #tpu.memory_space<vmem>>, vector<2x1x16xf32>,
      %72 = vector.extract_strided_slice %22 {offsets = [0, 8, 1], sizes = [2, 1, 16], strides = [1, 1, 1]} : vector<2x24x128xf32> to vector<2x1x16xf32>
      %73 = vector.broadcast %43 : f32 to vector<2x1x16xf32>
      %74 = arith.mulf %72, %73 : vector<2x1x16xf32>
      %c0_36 = arith.constant 0 : index
      %c0_37 = arith.constant 0 : index
      %c112 = arith.constant 112 : index
      %75 = vector.load %arg4[%c0_36, %c0_37, %c112] : memref<2x1x256xf32, #tpu.memory_space<vmem>>, vector<2x1x16xf32>
      tpu.vector_store %arg4[%c0_36, %c0_37, %c112], %74 {strides = array<i32>} : memref<2x1x256xf32, #tpu.memory_space<vmem>>, vector<2x1x16xf32>,
      %76 = vector.extract_strided_slice %22 {offsets = [0, 9, 1], sizes = [2, 1, 16], strides = [1, 1, 1]} : vector<2x24x128xf32> to vector<2x1x16xf32>
      %77 = vector.broadcast %43 : f32 to vector<2x1x16xf32>
      %78 = arith.mulf %76, %77 : vector<2x1x16xf32>
      %c0_38 = arith.constant 0 : index
      %c0_39 = arith.constant 0 : index
      %c128 = arith.constant 128 : index
      %79 = vector.load %arg4[%c0_38, %c0_39, %c128] : memref<2x1x256xf32, #tpu.memory_space<vmem>>, vector<2x1x16xf32>
      tpu.vector_store %arg4[%c0_38, %c0_39, %c128], %78 {strides = array<i32>} : memref<2x1x256xf32, #tpu.memory_space<vmem>>, vector<2x1x16xf32>,
      %80 = vector.extract_strided_slice %22 {offsets = [0, 10, 1], sizes = [2, 1, 16], strides = [1, 1, 1]} : vector<2x24x128xf32> to vector<2x1x16xf32>
      %81 = vector.broadcast %43 : f32 to vector<2x1x16xf32>
      %82 = arith.mulf %80, %81 : vector<2x1x16xf32>
      %c0_40 = arith.constant 0 : index
      %c0_41 = arith.constant 0 : index
      %c144 = arith.constant 144 : index
      %83 = vector.load %arg4[%c0_40, %c0_41, %c144] : memref<2x1x256xf32, #tpu.memory_space<vmem>>, vector<2x1x16xf32>
      tpu.vector_store %arg4[%c0_40, %c0_41, %c144], %82 {strides = array<i32>} : memref<2x1x256xf32, #tpu.memory_space<vmem>>, vector<2x1x16xf32>,
      %84 = vector.extract_strided_slice %22 {offsets = [0, 11, 1], sizes = [2, 1, 16], strides = [1, 1, 1]} : vector<2x24x128xf32> to vector<2x1x16xf32>
      %85 = vector.broadcast %43 : f32 to vector<2x1x16xf32>
      %86 = arith.mulf %84, %85 : vector<2x1x16xf32>
      %c0_42 = arith.constant 0 : index
      %c0_43 = arith.constant 0 : index
      %c160 = arith.constant 160 : index
      %87 = vector.load %arg4[%c0_42, %c0_43, %c160] : memref<2x1x256xf32, #tpu.memory_space<vmem>>, vector<2x1x16xf32>
      tpu.vector_store %arg4[%c0_42, %c0_43, %c160], %86 {strides = array<i32>} : memref<2x1x256xf32, #tpu.memory_space<vmem>>, vector<2x1x16xf32>,
      %88 = vector.extract_strided_slice %22 {offsets = [0, 12, 1], sizes = [2, 1, 16], strides = [1, 1, 1]} : vector<2x24x128xf32> to vector<2x1x16xf32>
      %89 = vector.broadcast %43 : f32 to vector<2x1x16xf32>
      %90 = arith.mulf %88, %89 : vector<2x1x16xf32>
      %c0_44 = arith.constant 0 : index
      %c0_45 = arith.constant 0 : index
      %c176 = arith.constant 176 : index
      %91 = vector.load %arg4[%c0_44, %c0_45, %c176] : memref<2x1x256xf32, #tpu.memory_space<vmem>>, vector<2x1x16xf32>
      tpu.vector_store %arg4[%c0_44, %c0_45, %c176], %90 {strides = array<i32>} : memref<2x1x256xf32, #tpu.memory_space<vmem>>, vector<2x1x16xf32>,
      %92 = vector.extract_strided_slice %22 {offsets = [0, 13, 1], sizes = [2, 1, 16], strides = [1, 1, 1]} : vector<2x24x128xf32> to vector<2x1x16xf32>
      %93 = vector.broadcast %43 : f32 to vector<2x1x16xf32>
      %94 = arith.mulf %92, %93 : vector<2x1x16xf32>
      %c0_46 = arith.constant 0 : index
      %c0_47 = arith.constant 0 : index
      %c192 = arith.constant 192 : index
      %95 = vector.load %arg4[%c0_46, %c0_47, %c192] : memref<2x1x256xf32, #tpu.memory_space<vmem>>, vector<2x1x16xf32>
      tpu.vector_store %arg4[%c0_46, %c0_47, %c192], %94 {strides = array<i32>} : memref<2x1x256xf32, #tpu.memory_space<vmem>>, vector<2x1x16xf32>,
      %96 = vector.extract_strided_slice %22 {offsets = [0, 14, 1], sizes = [2, 1, 16], strides = [1, 1, 1]} : vector<2x24x128xf32> to vector<2x1x16xf32>
      %97 = vector.broadcast %43 : f32 to vector<2x1x16xf32>
      %98 = arith.mulf %96, %97 : vector<2x1x16xf32>
      %c0_48 = arith.constant 0 : index
      %c0_49 = arith.constant 0 : index
      %c208 = arith.constant 208 : index
      %99 = vector.load %arg4[%c0_48, %c0_49, %c208] : memref<2x1x256xf32, #tpu.memory_space<vmem>>, vector<2x1x16xf32>
      tpu.vector_store %arg4[%c0_48, %c0_49, %c208], %98 {strides = array<i32>} : memref<2x1x256xf32, #tpu.memory_space<vmem>>, vector<2x1x16xf32>,
      %100 = vector.extract_strided_slice %22 {offsets = [0, 15, 1], sizes = [2, 1, 16], strides = [1, 1, 1]} : vector<2x24x128xf32> to vector<2x1x16xf32>
      %101 = vector.broadcast %43 : f32 to vector<2x1x16xf32>
      %102 = arith.mulf %100, %101 : vector<2x1x16xf32>
      %c0_50 = arith.constant 0 : index
      %c0_51 = arith.constant 0 : index
      %c224 = arith.constant 224 : index
      %103 = vector.load %arg4[%c0_50, %c0_51, %c224] : memref<2x1x256xf32, #tpu.memory_space<vmem>>, vector<2x1x16xf32>
      tpu.vector_store %arg4[%c0_50, %c0_51, %c224], %102 {strides = array<i32>} : memref<2x1x256xf32, #tpu.memory_space<vmem>>, vector<2x1x16xf32>,
      %104 = vector.extract_strided_slice %22 {offsets = [0, 16, 1], sizes = [2, 1, 16], strides = [1, 1, 1]} : vector<2x24x128xf32> to vector<2x1x16xf32>
      %105 = vector.broadcast %43 : f32 to vector<2x1x16xf32>
      %106 = arith.mulf %104, %105 : vector<2x1x16xf32>
      %c0_52 = arith.constant 0 : index
      %c0_53 = arith.constant 0 : index
      %c240 = arith.constant 240 : index
      %107 = vector.load %arg4[%c0_52, %c0_53, %c240] : memref<2x1x256xf32, #tpu.memory_space<vmem>>, vector<2x1x16xf32>
      tpu.vector_store %arg4[%c0_52, %c0_53, %c240], %106 {strides = array<i32>} : memref<2x1x256xf32, #tpu.memory_space<vmem>>, vector<2x1x16xf32>,
    } else {
    }
    %c0 = arith.constant 0 : index
    %c0_1 = arith.constant 0 : index
    %c0_2 = arith.constant 0 : index
    %3 = vector.load %arg2[%c0, %c0_1, %c0_2] : memref<2x4x256xf32, #tpu.memory_space<vmem>>, vector<2x4x256xf32>
    %c0_3 = arith.constant 0 : index
    %c0_4 = arith.constant 0 : index
    %c0_5 = arith.constant 0 : index
    %4 = vector.load %arg4[%c0_3, %c0_4, %c0_5] : memref<2x1x256xf32, #tpu.memory_space<vmem>>, vector<2x1x256xf32>
    %5 = vector.broadcast %4 : vector<2x1x256xf32> to vector<2x4x256xf32>
    %6 = arith.mulf %3, %5 : vector<2x4x256xf32>
    %c0_6 = arith.constant 0 : index
    %c0_7 = arith.constant 0 : index
    %c0_8 = arith.constant 0 : index
    %7 = vector.load %arg3[%c0_6, %c0_7, %c0_8] : memref<2x4x256xf32, #tpu.memory_space<vmem>>, vector<2x4x256xf32>
    tpu.vector_store %arg3[%c0_6, %c0_7, %c0_8], %6 {strides = array<i32>} : memref<2x4x256xf32, #tpu.memory_space<vmem>>, vector<2x4x256xf32>,
    return
  }
  func.func @transform_0(%arg0: i32) -> (i32, i32, i32) {
    %c0_i32 = arith.constant 0 : i32
    %c0_i32_0 = arith.constant 0 : i32
    %c0_i32_1 = arith.constant 0 : i32
    %c0_i32_2 = arith.constant 0 : i32
    return %c0_i32, %c0_i32_0, %c0_i32_1 : i32, i32, i32
  }
  func.func @transform_1(%arg0: i32) -> (i32, i32, i32) {
    %c0_i32 = arith.constant 0 : i32
    %c0_i32_0 = arith.constant 0 : i32
    %c0_i32_1 = arith.constant 0 : i32
    return %c0_i32, %arg0, %c0_i32_0 : i32, i32, i32
  }
  func.func @transform_2(%arg0: i32) -> (i32, i32, i32) {
    %c0_i32 = arith.constant 0 : i32
    %c0_i32_0 = arith.constant 0 : i32
    %c0_i32_1 = arith.constant 0 : i32
    return %c0_i32, %arg0, %c0_i32_0 : i32, i32, i32
  }
}

</mosaic_0001>

<bundles_post_ra>
// kernel: tpu_custom_call.1
= control target key start
LH: loop header
LB: loop body
LE: loop exit
PB: predicated region body
PF: predicated region fallthrough
CT: control target
= control target key end

     0   :  { %7 = vsyncpa [#allocation4], 0  ;;  %s1088_s0 = inlined_call_operand.hbm [shape: f32[2,24,128], index: 0, kind: input, shape index: {}]   ;;  %s1089_s1 = inlined_call_operand.hbm [shape: f32[2,4,256], index: 1, kind: input, shape index: {}]   ;;  %s1090_s2 = inlined_call_operand.hbm [shape: f32[2,4,256], index: 2, kind: output, shape index: {}]  }
   0x1   :  { %8 = vsyncpa [#allocation7], 0 }
   0x2   :  { %9 = vsyncpa [#allocation5], 0  ;;  %s760_s9 = smov [#allocation3]   ;;  %s688_s13 = scalar_lea.hbm %s1088_s0, 768 }
   0x3   :  { %s15_s10 = sshll.u32 %s760_s9, 4  ;;  %p689_p0 = scmp.ne.s32.totalorder %s1088_s0, %s688_s13  ;;  %s16_s10 = int_to_ptr.vmem [resolvable:$true] %s15_s10 }
   0x4   :  { %p692_p1 = scmp.lt.u32.totalorder %s688_s13, %s1088_s0 }
   0x6   :  { %p694_p2 = pnand %p692_p1, %p689_p0 }
   0x8   :  { %697 = shalt.err (!%p694_p2)
}
   0x9   :  { %s698_s18 = scalar_lea.vmem %s16_s10, 768  ;;  %p703_p4 = scmp.lt.s32.totalorder %s16_s10, %s16_s10 }
   0xa   :  { %p699_p3 = scmp.ne.s32.totalorder %s16_s10, %s698_s18  ;;  %p704_p5 = scmp.lt.s32.totalorder %s698_s18, %s698_s18 }
   0xc   :  { %p705_p6 = por %p704_p5, %p703_p4 }
   0xe   :  { %p706_p7 = pnand %p705_p6, %p699_p3 }
  0x10   :  { %709 = shalt.err (!%p706_p7)
}
  0x11   :  { %s761_s19 = smov 128   ;;  %s762_s20 = smov 8  }
  0x12   :  { %21 = dma.hbm_to_vmem [thread:$0]  %s1088_s0, 768, %s16_s10, [#allocation4], %s761_s19, %s761_s19, %s762_s20  }
  0x13   :  { %s763_s23 = smov [#allocation6]   ;;  %s710_s27 = scalar_lea.hbm %s1089_s1, 256 }
  0x14   :  { %s27_s24 = sshll.u32 %s763_s23, 4  ;;  %p711_p8 = scmp.ne.s32.totalorder %s1089_s1, %s710_s27  ;;  %s28_s24 = int_to_ptr.vmem [resolvable:$true] %s27_s24 }
  0x15   :  { %p714_p9 = scmp.lt.u32.totalorder %s710_s27, %s1089_s1 }
  0x17   :  { %p716_p10 = pnand %p714_p9, %p711_p8 }
  0x19   :  { %719 = shalt.err (!%p716_p10)
}
  0x1a   :  { %s720_s4 = scalar_lea.vmem %s28_s24, 256  ;;  %p725_p12 = scmp.lt.s32.totalorder %s28_s24, %s28_s24 }
  0x1b   :  { %p721_p11 = scmp.ne.s32.totalorder %s28_s24, %s720_s4  ;;  %p726_p13 = scmp.lt.s32.totalorder %s720_s4, %s720_s4 }
  0x1d   :  { %p727_p0 = por %p726_p13, %p725_p12 }
  0x1f   :  { %p728_p1 = pnand %p727_p0, %p721_p11 }
  0x21   :  { %731 = shalt.err (!%p728_p1)
}
  0x22   :  { %33 = dma.hbm_to_vmem [thread:$0]  %s1089_s1, 256, %s28_s24, [#allocation7], %s761_s19, %s761_s19, %s762_s20  }
  0x23   :  { %754 = dma.done.wait [#allocation4], 768  }
  0x24   :  { %755 = vsyncadd [#allocation4], 4294966528 }
  0x25   :  { %756 = dma.done.wait [#allocation7], 256  }
  0x26   :  { %757 = vsyncadd [#allocation7], 4294967040  ;;  %v44_v0 = vld [vmem:[#allocation3] sm:$0xff]  ;;  %v45_v1 = vld [vmem:[#allocation3 + $0x8] sm:$0xff]  ;;  %v764_v3 = vmov 0.0   ;;  %s765_s1 = smov 127   ;;  %v110_v17 = vlaneseq }
  0x27   :  { %v46_v2 = vld [vmem:[#allocation3 + $0x10] sm:$0xff]  ;;  %vm50_vm0 = vcmp.lt.f32.partialorder %v44_v0, 0.014512472  ;;  %vm51_vm1 = vcmp.lt.f32.partialorder %v45_v1, 0.014512472  ;;  %v47_v7 = vld [vmem:[#allocation3 + $0x18] sm:$0xff] }
  0x28   :  { %vm52_vm2 = vcmp.lt.f32.partialorder %v46_v2, 0.014512472  ;;  %v634_v4 = vsel %vm50_vm0, 1.0, %v764_v3  ;;  %v635_v5 = vsel %vm51_vm1, 1.0, %v764_v3  ;;  %v49_v8 = vld [vmem:[#allocation3 + $0x28] sm:$0xff]  ;;  %v48_v9 = vld [vmem:[#allocation3 + $0x20] sm:$0xff] }
  0x29   :  { %v636_v6 = vsel %vm52_vm2, 1.0, %v764_v3  ;;  %v671_v10 = vpack.i.bf16 %v635_v5, %v634_v4  ;;  %vm53_vm3 = vcmp.lt.f32.partialorder %v47_v7, 0.014512472  ;;  %vm55_vm4 = vcmp.lt.f32.partialorder %v49_v8, 0.014512472  ;;  %s766_s6 = smov 1  }
  0x2a   :  { %v637_v11 = vsel %vm53_vm3, 1.0, %v764_v3  ;;  %vm54_vm5 = vcmp.lt.f32.partialorder %v48_v9, 0.014512472  ;;  %v639_v13 = vsel %vm55_vm4, 1.0, %v764_v3  ;;  %v827_v24 = vshrl.u32 %v110_v17, 7  ;;  %s767_s8 = smov 1.0  }
  0x2b   :  { %672 = vrot.lane.b32.xlu1 %v671_v10, %s765_s1  ;;  %662 = vrot.lane.b32.xlu0 %v671_v10, %s766_s6  ;;  %v666_v12 = vpack.i.bf16 %v637_v11, %v636_v6  ;;  %v638_v14 = vsel %vm54_vm5, 1.0, %v764_v3  ;;  %v681_v15 = vpack.i.bf16 %v639_v13, %v637_v11  ;;  %v830_v29 = vand.u32 127, %v110_v17  ;;  %s769_s12 = smov 111   ;;  %s770_s13 = smov 47  }
  0x2c   :  { %v676_v16 = vpack.i.bf16 %v638_v14, %v639_v13  ;;  %vm112_vm6 = vcmp.lt.s32.totalorder %v827_v24, 1  ;;  %vm131_vm7 = vcmp.lt.s32.totalorder %v827_v24, 7  ;;  %v151_v40 = vadd.s32 16, %v827_v24  ;;  %s771_s14 = smov 31   ;;  %s772_s15 = smov 63  }
  0x2d   :  { %vm163_vm8 = vcmp.ge.s32.totalorder %v830_v29, 1  ;;  %vm154_vm9 = vcmp.ge.s32.totalorder %v827_v24, 1  ;;  %vm167_vm10 = vcmp.lt.s32.totalorder %v830_v29, 17  ;;  %s773_s16 = smov 79   ;;  %s774_s17 = smov 15   ;;  %vm253_vm1 = vcmp.lt.s32.totalorder %v110_v17, 16 }
  0x2e   :  { %vm159_vm11 = vcmp.lt.s32.totalorder %v151_v40, 17  ;;  %vm164_vm12 = vmand %vm154_vm9, %vm163_vm8  ;;  %s775_s18 = smov 95   ;;  %vm265_vm2 = vcmp.ge.s32.totalorder %v110_v17, 16  ;;  %vm266_vm3 = vcmp.lt.s32.totalorder %v110_v17, 32  ;;  %vm278_vm5 = vcmp.ge.s32.totalorder %v110_v17, 32  ;;  %s776_s21 = smov [#allocation8]  }
  0x2f   :  { %90 = vrot.lane.b32.xlu1 %v636_v6, %s765_s1  ;;  %667 = vrot.lane.b32.xlu0 %v666_v12, %s766_s6  ;;  %vm863_vm13 = vmand %vm159_vm11, %vm163_vm8  ;;  %vm320_vm9 = vcmp.lt.s32.totalorder %v110_v17, 64  ;;  %vm346_vm11 = vcmp.ge.s32.totalorder %v110_v17, 64  ;;  %s621_s22 = sshll.u32 %s776_s21, 4  ;;  %s622_s22 = int_to_ptr.vmem [resolvable:$true] %s621_s22 }
  0x30   :  { %vm873_vm14 = vmand %vm164_vm12, %vm167_vm10  ;;  %vm347_vm12 = vcmp.lt.s32.totalorder %v110_v17, 80  ;;  %s732_s23 = scalar_lea.vmem %s622_s22, 256  ;;  %p737_p3 = scmp.lt.s32.totalorder %s622_s22, %s622_s22 }
  0x31   :  { %vm883_vm15 = vmand %vm163_vm8, %vm167_vm10  ;;  %vm319_vm8 = vcmp.ge.s32.totalorder %v110_v17, 48  ;;  %p733_p2 = scmp.ne.s32.totalorder %s622_s22, %s732_s23  ;;  %p738_p4 = scmp.lt.s32.totalorder %s732_s23, %s732_s23 }
  0x32   :  { %vm170_vm0 = vmand %vm863_vm13, %vm167_vm10  ;;  %vm359_vm13 = vcmp.ge.s32.totalorder %v110_v17, 80 }
  0x33   :  { %682 = vrot.lane.b32.xlu1 %v681_v15, %s765_s1  ;;  %677 = vrot.lane.b32.xlu0 %v676_v16, %s766_s6  ;;  %vm267_vm4 = vmand %vm265_vm2, %vm266_vm3  ;;  %vm415_vm2 = vcmp.ge.s32.totalorder %v110_v17, 112  ;;  %vm416_vm3 = vcmp.lt.s32.totalorder %v110_v17, 128  ;;  %p739_p5 = por %p738_p4, %p737_p3 }
  0x34   :  { %vm996_vm10 = vmand %vm319_vm8, %vm320_vm9 }
  0x35   :  { %p740_p6 = pnand %p739_p5, %p733_p2 }
  0x37   :  { %94 = vrot.lane.b32.xlu0 %v638_v14, %s765_s1 }
  0x9d   :  { %v673_v18 = vpop.permute.xlu1 %672  ;;  %v663_v19 = vpop.permute.xlu0 %662 }
  0x9e   :  { %v675_v20 = vunpack.i.h.bf16 %v673_v18  ;;  %v674_v21 = vunpack.i.l.bf16 %v673_v18  ;;  %v665_v22 = vunpack.i.h.bf16 %v663_v19  ;;  %v664_v23 = vunpack.i.l.bf16 %v663_v19 }
  0xa0   :  { %v81_v25 = vmax.f32 %v635_v5, %v665_v22  ;;  %v80_v26 = vmax.f32 %v634_v4, %v664_v23 }
  0xa1   :  { %v91_v27 = vpop.permute.xlu1 %90  ;;  %v668_v28 = vpop.permute.xlu0 %667 }
  0xa2   :  { %v99_v30 = vmax.f32 %v81_v25, %v675_v20  ;;  %v98_v31 = vmax.f32 %v80_v26, %v674_v21  ;;  %v670_v32 = vunpack.i.h.bf16 %v668_v28  ;;  %v669_v33 = vunpack.i.l.bf16 %v668_v28 }
  0xa4   :  { %v106_v34 = vrot.slane %v99_v30, 7  ;;  %v104_v35 = vrot.slane %v98_v31, 7  ;;  %v127_v36 = vrot.slane %v99_v30, 1  ;;  %v82_v37 = vmax.f32 %v636_v6, %v669_v33 }
  0xa5   :  { %v683_v38 = vpop.permute.xlu1 %682  ;;  %v678_v39 = vpop.permute.xlu0 %677  ;;  %v125_v41 = vrot.slane %v98_v31, 1  ;;  %v83_v42 = vmax.f32 %v637_v11, %v670_v32 }
  0xa6   :  { %v684_v43 = vunpack.i.l.bf16 %v683_v38  ;;  %v680_v44 = vunpack.i.h.bf16 %v678_v39  ;;  %v115_v45 = vsel %vm112_vm6, %v104_v35, %v106_v34  ;;  %v100_v46 = vmax.f32 %v82_v37, %v91_v27 }
  0xa7   :  { %v685_v47 = vunpack.i.h.bf16 %v683_v38  ;;  %v679_v48 = vunpack.i.l.bf16 %v678_v39  ;;  %v120_v55 = vmax.f32 %v99_v30, %v115_v45  ;;  %v134_v58 = vsel %vm131_vm7, %v125_v41, %v127_v36 }
  0xa8   :  { %v101_v49 = vmax.f32 %v83_v42, %v684_v43  ;;  %v84_v50 = vmax.f32 %v638_v14, %v680_v44  ;;  %v108_v51 = vrot.slane %v100_v46, 7  ;;  %v129_v52 = vrot.slane %v100_v46, 1 }
  0xa9   :  { %v85_v53 = vmax.f32 %v639_v13, %v679_v48  ;;  %v95_v54 = vpop.permute.xlu0 %94 }
  0xaa   :  { %v105_v56 = vrot.slane %v101_v49, 7  ;;  %v102_v57 = vmax.f32 %v84_v50, %v95_v54  ;;  %v113_v60 = vsel %vm112_vm6, %v106_v34, %v108_v51  ;;  %v117_v61 = vsel %vm112_vm6, %v108_v51, %v104_v35 }
  0xab   :  { %v103_v59 = vmax.f32 %v85_v53, %v685_v47  ;;  %v132_v62 = vsel %vm131_vm7, %v127_v36, %v129_v52  ;;  %v119_v1 = vmax.f32 %v98_v31, %v117_v61  ;;  %v121_v2 = vmax.f32 %v100_v46, %v113_v60 }
  0xac   :  { %v107_v63 = vrot.slane %v102_v57, 7  ;;  %v128_v0 = vrot.slane %v102_v57, 1  ;;  %v136_v5 = vsel %vm131_vm7, %v129_v52, %v125_v41  ;;  %v854_v6 = vmax.f32 %v120_v55, %v132_v62 }
  0xad   :  { %v109_v3 = vrot.slane %v103_v59, 7  ;;  %v130_v4 = vrot.slane %v103_v59, 1  ;;  %v138_v8 = vmax.f32 %v119_v1, %v134_v58  ;;  %v858_v9 = vmax.f32 %v121_v2, %v136_v5 }
  0xae   :  { %v116_v7 = vsel %vm112_vm6, %v105_v56, %v107_v63  ;;  %v126_v11 = vrot.slane %v101_v49, 1  ;;  %v145_v25 = vsub.f32 1.0, %v854_v6  ;;  %v768_v53 = vmov 1966171168  }
  0xaf   :  { %v123_v12 = vmax.f32 %v102_v57, %v116_v7  ;;  %v114_v13 = vsel %vm112_vm6, %v107_v63, %v109_v3  ;;  %v118_v14 = vsel %vm112_vm6, %v109_v3, %v105_v56  ;;  %v133_v19 = vsel %vm131_vm7, %v128_v0, %v130_v4 }
  0xb0   :  { %v122_v16 = vmax.f32 %v101_v49, %v118_v14  ;;  %v124_v18 = vmax.f32 %v103_v59, %v114_v13  ;;  %v144_v20 = vsub.f32 1.0, %v138_v8  ;;  %v135_v22 = vsel %vm131_vm7, %v126_v11, %v128_v0 }
  0xb1   :  { %v142_v23 = vmax.f32 %v123_v12, %v133_v19  ;;  %v146_v26 = vsub.f32 1.0, %v858_v9  ;;  %v137_v27 = vsel %vm131_vm7, %v130_v4, %v126_v11  ;;  %v172_v32 = vsel %vm883_vm15, %v145_v25, 0.0 }
  0xb2   :  { %v141_v28 = vmax.f32 %v122_v16, %v135_v22  ;;  %v171_v30 = vsel %vm873_vm14, %v144_v20, 0.0  ;;  %v143_v31 = vmax.f32 %v124_v18, %v137_v27  ;;  %v202_v54 = vunpack.c.l.s4 %v768_v53 }
  0xb3   :  { %v177_v34 = vadd.f32 %v172_v32, %v171_v30  ;;  %v148_v35 = vsub.f32 1.0, %v142_v23  ;;  %v173_v36 = vsel %vm170_vm0, %v146_v26, 0.0  ;;  %vm279_vm6 = vcmp.lt.s32.totalorder %v110_v17, 48 }
  0xb4   :  { %v147_v33 = vsub.f32 1.0, %v141_v28  ;;  %v149_v38 = vsub.f32 1.0, %v143_v31  ;;  %v203_v55 = vunpack.c.0.s8 %v202_v54  ;;  %vm988_vm7 = vmand %vm278_vm5, %vm279_vm6 }
  0xb5   :  { %v178_v29 = vadd.f32 %v177_v34, %v173_v36  ;;  %v175_v40 = vsel %vm883_vm15, %v148_v35, 0.0  ;;  %vm372_vm15 = vcmp.ge.s32.totalorder %v110_v17, 96  ;;  %vm1028_vm6 = vmand %vm415_vm2, %vm416_vm3 }
  0xb6   :  { %v174_v37 = vsel %vm873_vm14, %v147_v33, 0.0  ;;  %v176_v42 = vsel %vm170_vm0, %v149_v38, 0.0  ;;  %v908_v56 = vsub.s32 %v203_v55, %v827_v24  ;;  %vm360_vm14 = vcmp.lt.s32.totalorder %v110_v17, 96 }
  0xb7   :  { %v179_v39 = vadd.f32 %v178_v29, %v174_v37  ;;  %vm373_vm0 = vcmp.lt.s32.totalorder %v110_v17, 112 }
  0xb8   :  { %vm1022_vm5 = vmand %vm372_vm15, %vm373_vm0 }
  0xb9   :  { %v180_v41 = vadd.f32 %v179_v39, %v175_v40 }
  0xbb   :  { %v181_v43 = vadd.f32 %v180_v41, %v176_v42 }
  0xbd   :  { %182 = vadd.xlane.f32.xlu1 %v181_v43 }
 0x14a   :  { %v183_v44 = vpop.xlane.xlu1 %182 }
 0x14b   :  { %v184_v45 = vrot.slane %v183_v44, 4 }
 0x14d   :  { %v185_v46 = vadd.f32 %v184_v45, %v183_v44 }
 0x14f   :  { %v186_v47 = vrot.slane %v185_v46, 2 }
 0x151   :  { %v187_v48 = vadd.f32 %v186_v47, %v185_v46 }
 0x153   :  { %v188_v49 = vrot.slane %v187_v48, 1 }
 0x155   :  { %v189_v50 = vadd.f32 %v188_v49, %v187_v48 }
 0x157   :  { %640 = vpush %v189_v50 }
 0x188   :  { %s641_s7 = spop %640 }
 0x189   :  { %s191_s9 = smax.f32 %s767_s8, %s641_s7 }
 0x18a   :  { %v192_v51 = vstv %s191_s9 }
 0x18b   :  { %686 = vrcp.f32 %v192_v51 }
 0x195   :  { %v687_v52 = vpop.eup %686 }
 0x196   :  { %642 = vpush %v687_v52 }
 0x1c7   :  { %s643_s10 = spop %642 }
 0x1c8   :  { %s195_s11 = smul.f32 512.0, %s643_s10 }
 0x1ca   :  { %v196_v57 = vstv %s195_s11 }
 0x1cb   :  { %v197_v58 = vmul.f32 %v196_v57, %v144_v20  ;;  %v910_v59 = vmul.f32 %v196_v57, %v147_v33  ;;  %v912_v60 = vmul.f32 %v196_v57, %v148_v35  ;;  %v377_v61 = vmul.f32 %v196_v57, %v145_v25 }
 0x1cc   :  { %v547_v14 = vmul.f32 %v196_v57, %v149_v38  ;;  %v546_v38 = vmul.f32 %v196_v57, %v146_v26 }
 0x1cd   :  { %v401_v62 = vrot.slane %v912_v60, %v908_v56  ;;  %v387_v63 = vrot.slane %v377_v61, %v908_v56  ;;  %v464_v0 = vcombine.high %v377_v61, %v377_v61  ;;  %v207_v1 = vrot.slane %v197_v58, %v908_v56 }
 0x1ce   :  { %v229_v2 = vrot.slane %v910_v59, %v908_v56  ;;  %v283_v3 = vcombine.high %v197_v58, %v197_v58  ;;  %v570_v19 = vrot.slane %v547_v14, %v908_v56  ;;  %v556_v41 = vrot.slane %v546_v38, %v908_v56 }
 0x1cf   :  { %v408_v4 = vrot.slane %v401_v62, %v908_v56  ;;  %v394_v5 = vrot.slane %v387_v63, %v908_v56  ;;  %v471_v6 = vrot.slane %v464_v0, %v908_v56  ;;  %v208_v7 = vcombine.high %v207_v1, %v207_v1 }
 0x1d0   :  { %v230_v8 = vcombine.high %v229_v2, %v229_v2  ;;  %v290_v13 = vrot.slane %v283_v3, %v908_v56  ;;  %v420_v18 = vcombine.high %v387_v63, %v387_v63  ;;  %v935_v20 = vrot.slane %v570_v19, %v908_v56 }
 0x1d1   :  { %411 = vrot.lane.b32.xlu0 %v408_v4, %s769_s12  ;;  %409 = vrot.lane.b32.xlu1 %v394_v5, %s769_s12  ;;  %v478_v10 = vrot.slane %v471_v6, %v908_v56  ;;  %v222_v11 = vrot.slane %v208_v7, %v908_v56  ;;  %v502_v23 = vcombine.high %v471_v6, %v471_v6 }
 0x1d2   :  { %v244_v12 = vrot.slane %v230_v8, %v908_v56  ;;  %v324_v16 = vcombine.high %v290_v13, %v290_v13  ;;  %v427_v22 = vrot.slane %v420_v18, %v908_v56  ;;  %v428_v25 = vcombine.high %v401_v62, %v401_v62 }
 0x1d3   :  { %v509_v27 = vrot.slane %v502_v23, %v908_v56  ;;  %v297_v30 = vrot.slane %v290_v13, %v908_v56  ;;  %v215_v31 = vrot.slane %v207_v1, %v908_v56  ;;  %v237_v34 = vrot.slane %v229_v2, %v908_v56 }
 0x1d4   :  { %v271_v15 = vcombine.high %v244_v12, %v244_v12  ;;  %v331_v21 = vrot.slane %v324_v16, %v908_v56  ;;  %v435_v28 = vrot.slane %v428_v25, %v908_v56  ;;  %v526_v35 = vcombine.high %v478_v10, %v478_v10 }
 0x1d5   :  { %494 = vrot.lane.b32.xlu1 %v478_v10, %s770_s13  ;;  %245 = vrot.lane.b32.xlu0 %v222_v11, %s765_s1  ;;  %v351_v32 = vcombine.high %v297_v30, %v297_v30  ;;  %v257_v33 = vcombine.high %v215_v31, %v215_v31  ;;  %v258_v36 = vcombine.high %v237_v34, %v237_v34  ;;  %v598_v31 = vsub.s32 1, %v827_v24 }
 0x1d6   :  { %v364_v37 = vcombine.high %v331_v21, %v331_v21  ;;  %v444_v29 = vcombine.high %v394_v5, %v394_v5  ;;  %v536_v39 = vcombine.high %v509_v27, %v509_v27  ;;  %v445_v40 = vcombine.high %v408_v4, %v408_v4 }
 0x1d7   :  { %v298_v42 = vcombine.high %v910_v59, %v910_v59  ;;  %v563_v43 = vrot.slane %v556_v41, %v908_v56  ;;  %v479_v9 = vcombine.high %v912_v60, %v912_v60  ;;  %v270_v47 = vcombine.high %v222_v11, %v222_v11 }
 0x1d8   :  { %v454_v48 = vcombine.high %v427_v22, %v427_v22  ;;  %v455_v49 = vcombine.high %v435_v28, %v435_v28 }
 0x1d9   :  { %274 = vrot.lane.b32.xlu1 %v271_v15, %s771_s14  ;;  %247 = vrot.lane.b32.xlu0 %v244_v12, %s765_s1  ;;  %v305_v44 = vrot.slane %v298_v42, %v908_v56  ;;  %v486_v45 = vrot.slane %v479_v9, %v908_v56  ;;  %v587_v9 = vld [vmem:[#allocation6 + $0x8] sm:$0xff] }
 0x1db   :  { %v312_v26 = vrot.slane %v305_v44, %v908_v56  ;;  %v493_v46 = vrot.slane %v486_v45, %v908_v56  ;;  %v332_v50 = vcombine.high %v305_v44, %v305_v44  ;;  %v510_v52 = vcombine.high %v486_v45, %v486_v45 }
 0x1dd   :  { %340 = vrot.lane.b32.xlu1 %v331_v21, %s772_s15  ;;  %436 = vrot.lane.b32.xlu0 %v427_v22, %s765_s1  ;;  %v339_v51 = vrot.slane %v332_v50, %v908_v56  ;;  %v517_v53 = vrot.slane %v510_v52, %v908_v56  ;;  %v352_v54 = vcombine.high %v312_v26, %v312_v26 }
 0x1de   :  { %v527_v55 = vcombine.high %v493_v46, %v493_v46 }
 0x1df   :  { %v365_v57 = vcombine.high %v339_v51, %v339_v51  ;;  %v537_v58 = vcombine.high %v517_v53, %v517_v53 }
 0x1e1   :  { %518 = vrot.lane.b32.xlu1 %v509_v27, %s772_s15  ;;  %438 = vrot.lane.b32.xlu0 %v435_v28, %s765_s1 }
 0x1e5   :  { %353 = vrot.lane.b32.xlu1 %v351_v32, %s773_s16  ;;  %259 = vrot.lane.b32.xlu0 %v257_v33, %s774_s17 }
 0x1e9   :  { %528 = vrot.lane.b32.xlu1 %v526_v35, %s773_s16  ;;  %261 = vrot.lane.b32.xlu0 %v258_v36, %s774_s17  ;;  %v586_v36 = vld [vmem:[#allocation6] sm:$0xff] }
 0x1ed   :  { %366 = vrot.lane.b32.xlu1 %v364_v37, %s775_s18  ;;  %446 = vrot.lane.b32.xlu0 %v444_v29, %s774_s17 }
 0x1f1   :  { %538 = vrot.lane.b32.xlu1 %v536_v39, %s775_s18  ;;  %448 = vrot.lane.b32.xlu0 %v445_v40, %s774_s17 }
 0x1f5   :  { %578 = vrot.lane.b32.xlu1 %v563_v43, %s769_s12  ;;  %313 = vrot.lane.b32.xlu0 %v297_v30, %s770_s13  ;;  %v594_v30 = vsub.s32 0, %v827_v24 }
 0x1f9   :  { %315 = vrot.lane.b32.xlu0 %v312_v26, %s770_s13 }
 0x1fd   :  { %496 = vrot.lane.b32.xlu0 %v493_v46, %s770_s13 }
 0x201   :  { %272 = vrot.lane.b32.xlu0 %v270_v47, %s771_s14 }
 0x205   :  { %456 = vrot.lane.b32.xlu0 %v454_v48, %s771_s14 }
 0x209   :  { %458 = vrot.lane.b32.xlu0 %v455_v49, %s771_s14 }
 0x20d   :  { %342 = vrot.lane.b32.xlu0 %v339_v51, %s772_s15 }
 0x211   :  { %520 = vrot.lane.b32.xlu0 %v517_v53, %s772_s15 }
 0x215   :  { %355 = vrot.lane.b32.xlu0 %v352_v54, %s773_s16 }
 0x219   :  { %530 = vrot.lane.b32.xlu0 %v527_v55, %s773_s16 }
 0x21d   :  { %368 = vrot.lane.b32.xlu0 %v365_v57, %s775_s18 }
 0x221   :  { %540 = vrot.lane.b32.xlu0 %v537_v58, %s775_s18 }
 0x225   :  { %580 = vrot.lane.b32.xlu0 %v935_v20, %s769_s12 }
 0x243   :  { %v981_v59 = vpop.permute.xlu0 %411  ;;  %v410_v56 = vpop.permute.xlu1 %409 }
 0x247   :  { %v246_v60 = vpop.permute.xlu0 %245  ;;  %v495_v62 = vpop.permute.xlu1 %494 }
 0x248   :  { %255 = vst.msk [vmem:[#allocation2] sm:$0x1] %vm253_vm1, %v246_v60 }
 0x24b   :  { %v248_v61 = vpop.permute.xlu0 %247  ;;  %v275_v0 = vpop.permute.xlu1 %274 }
 0x24c   :  { %256 = vst.msk [vmem:[#allocation2 + $0x2] sm:$0x1] %vm253_vm1, %v248_v61 }
 0x24f   :  { %v437_v63 = vpop.permute.xlu0 %436  ;;  %v341_v3 = vpop.permute.xlu1 %340 }
 0x250   :  { %442 = vst.msk [vmem:[#allocation2 + $0x1] sm:$0x1] %vm253_vm1, %v437_v63 }
 0x253   :  { %v439_v1 = vpop.permute.xlu0 %438  ;;  %v519_v6 = vpop.permute.xlu1 %518 }
 0x254   :  { %443 = vst.msk [vmem:[#allocation2 + $0x3] sm:$0x1] %vm253_vm1, %v439_v1  ;;  %vm1008_vm1 = vmand %vm346_vm11, %vm347_vm12 }
 0x257   :  { %v260_v2 = vpop.permute.xlu0 %259  ;;  %v354_v10 = vpop.permute.xlu1 %353 }
 0x258   :  { %268 = vst.msk [vmem:[#allocation2] sm:$0x1] %vm267_vm4, %v260_v2 }
 0x25b   :  { %v262_v5 = vpop.permute.xlu0 %261  ;;  %v529_v13 = vpop.permute.xlu1 %528 }
 0x25c   :  { %269 = vst.msk [vmem:[#allocation2 + $0x2] sm:$0x1] %vm267_vm4, %v262_v5 }
 0x25d   :  { %282 = vst.msk [vmem:[#allocation2 + $0x2] sm:$0x1] %vm988_vm7, %v275_v0 }
 0x25f   :  { %v447_v7 = vpop.permute.xlu0 %446  ;;  %v367_v16 = vpop.permute.xlu1 %366 }
 0x260   :  { %452 = vst.msk [vmem:[#allocation2 + $0x1] sm:$0x1] %vm267_vm4, %v447_v7 }
 0x263   :  { %v449_v8 = vpop.permute.xlu0 %448  ;;  %v539_v22 = vpop.permute.xlu1 %538 }
 0x264   :  { %453 = vst.msk [vmem:[#allocation2 + $0x3] sm:$0x1] %vm267_vm4, %v449_v8  ;;  %vm1016_vm4 = vmand %vm359_vm13, %vm360_vm14 }
 0x267   :  { %v314_v11 = vpop.permute.xlu0 %313  ;;  %v579_v27 = vpop.permute.xlu1 %578 }
 0x26b   :  { %v316_v14 = vpop.permute.xlu0 %315 }
 0x26c   :  { %323 = vst.msk [vmem:[#allocation2 + $0x2] sm:$0x1] %vm996_vm10, %v316_v14 }
 0x26f   :  { %v497_v15 = vpop.permute.xlu0 %496 }
 0x273   :  { %v273_v18 = vpop.permute.xlu0 %272 }
 0x274   :  { %281 = vst.msk [vmem:[#allocation2] sm:$0x1] %vm988_vm7, %v273_v18 }
 0x275   :  { %322 = vst.msk [vmem:[#allocation2] sm:$0x1] %vm996_vm10, %v314_v11 }
 0x276   :  { %349 = vst.msk [vmem:[#allocation2] sm:$0x1] %vm1008_vm1, %v341_v3 }
 0x277   :  { %v457_v23 = vpop.permute.xlu0 %456  ;;  %362 = vst.msk [vmem:[#allocation2] sm:$0x1] %vm1016_vm4, %v354_v10 }
 0x278   :  { %462 = vst.msk [vmem:[#allocation2 + $0x1] sm:$0x1] %vm988_vm7, %v457_v23 }
 0x279   :  { %375 = vst.msk [vmem:[#allocation2] sm:$0x1] %vm1022_vm5, %v367_v16 }
 0x27a   :  { %500 = vst.msk [vmem:[#allocation2 + $0x1] sm:$0x1] %vm996_vm10, %v495_v62 }
 0x27b   :  { %418 = vst.msk [vmem:[#allocation2] sm:$0x1] %vm1028_vm6, %v410_v56  ;;  %v459_v25 = vpop.permute.xlu0 %458 }
 0x27c   :  { %524 = vst.msk [vmem:[#allocation2 + $0x1] sm:$0x1] %vm1008_vm1, %v519_v6 }
 0x27d   :  { %534 = vst.msk [vmem:[#allocation2 + $0x1] sm:$0x1] %vm1016_vm4, %v529_v13 }
 0x27e   :  { %463 = vst.msk [vmem:[#allocation2 + $0x3] sm:$0x1] %vm988_vm7, %v459_v25 }
 0x27f   :  { %544 = vst.msk [vmem:[#allocation2 + $0x1] sm:$0x1] %vm1022_vm5, %v539_v22  ;;  %v343_v28 = vpop.permute.xlu0 %342 }
 0x280   :  { %501 = vst.msk [vmem:[#allocation2 + $0x3] sm:$0x1] %vm996_vm10, %v497_v15 }
 0x281   :  { %584 = vst.msk [vmem:[#allocation2 + $0x1] sm:$0x1] %vm1028_vm6, %v579_v27 }
 0x282   :  { %350 = vst.msk [vmem:[#allocation2 + $0x2] sm:$0x1] %vm1008_vm1, %v343_v28 }
 0x283   :  { %v521_v32 = vpop.permute.xlu0 %520 }
 0x284   :  { %525 = vst.msk [vmem:[#allocation2 + $0x3] sm:$0x1] %vm1008_vm1, %v521_v32 }
 0x287   :  { %v356_v37 = vpop.permute.xlu0 %355 }
 0x288   :  { %v588_v33 = vld [vmem:[#allocation2] sm:$0x3]  ;;  %363 = vst.msk [vmem:[#allocation2 + $0x2] sm:$0x1] %vm1016_vm4, %v356_v37 }
 0x289   :  { %v595_v34 = vrot.slane %v588_v33, %v594_v30  ;;  %v599_v35 = vrot.slane %v588_v33, %v598_v31 }
 0x28b   :  { %v608_v29 = vcombine.low %v595_v34, %v599_v35  ;;  %v531_v39 = vpop.permute.xlu0 %530 }
 0x28c   :  { %535 = vst.msk [vmem:[#allocation2 + $0x3] sm:$0x1] %vm1016_vm4, %v531_v39 }
 0x28d   :  { %v612_v38 = vmul.f32 %v608_v29, %v586_v36 }
 0x28f   :  { %614 = vst [vmem:[#allocation8] sm:$0xff] %v612_v38  ;;  %v369_v24 = vpop.permute.xlu0 %368 }
 0x290   :  { %376 = vst.msk [vmem:[#allocation2 + $0x2] sm:$0x1] %vm1022_vm5, %v369_v24 }
 0x291   :  { %419 = vst.msk [vmem:[#allocation2 + $0x2] sm:$0x1] %vm1028_vm6, %v981_v59 }
 0x293   :  { %v541_v40 = vpop.permute.xlu0 %540 }
 0x294   :  { %545 = vst.msk [vmem:[#allocation2 + $0x3] sm:$0x1] %vm1022_vm5, %v541_v40 }
 0x297   :  { %v581_v41 = vpop.permute.xlu0 %580 }
 0x298   :  { %585 = vst.msk [vmem:[#allocation2 + $0x3] sm:$0x1] %vm1028_vm6, %v581_v41 }
 0x29f   :  { %v589_v42 = vld [vmem:[#allocation2 + $0x2] sm:$0x3] }
 0x2a0   :  { %v603_v43 = vrot.slane %v589_v42, %v594_v30  ;;  %v607_v44 = vrot.slane %v589_v42, %v598_v31 }
 0x2a2   :  { %v609_v26 = vcombine.low %v603_v43, %v607_v44 }
 0x2a4   :  { %v613_v45 = vmul.f32 %v609_v26, %v587_v9 }
 0x2a6   :  { %615 = vst [vmem:[#allocation8 + $0x8] sm:$0xff] %v613_v45 }
 0x2a7   :  { %743 = shalt.err (!%p740_p6)
}
 0x2a8   :  { %s744_s26 = scalar_lea.hbm %s1090_s2, 256 }
 0x2a9   :  { %p745_p7 = scmp.ne.s32.totalorder %s1090_s2, %s744_s26  ;;  %p748_p8 = scmp.lt.u32.totalorder %s744_s26, %s1090_s2 }
 0x2ab   :  { %p750_p9 = pnand %p748_p8, %p745_p7 }
 0x2ad   :  { %753 = shalt.err (!%p750_p9)
}
 0x2ae   :  { %627 = dma.vmem_to_hbm [thread:$0]  %s622_s22, 256, %s1090_s2, [#allocation5], %s761_s19, %s761_s19, %s762_s20  }
 0x2af   :  { %758 = dma.done.wait [#allocation5], 256  }
 0x2b0   :  { %759 = vsyncadd [#allocation5], 4294967040 }
 0x2b1   :  { %631 = vsyncpa [#allocation4], 1 }
 0x2b2   :  { %632 = vsyncpa [#allocation7], 1 }
 0x2b3   :  { %633 = vsyncpa [#allocation5], 1 }

</bundles_post_ra>
